<compile_context>
chip_gen: v5e
topology: v5e:2x2
jax: 0.10.0
libtpu: 0.0.40
codegen_flags: <defaults>
</compile_context>

<pallas_src>
import functools
import math

import jax
import jax.numpy as jnp
from jax import lax
from jax.experimental import pallas as pl
from jax.experimental.pallas import tpu as pltpu

EPS = 1e-5
_NEG_INF = -1e30


def _round_up(a, b):
    return (a + b - 1) // b * b


# --------------------------------------------------------------------------- #
# Hardware / feature detection (generation-aware sizing)
# --------------------------------------------------------------------------- #
def _hw_info():
    kind = ""
    try:
        kind = jax.devices()[0].device_kind.lower()
    except Exception:
        pass
    is_v7 = ("7x" in kind) or ("v7" in kind)
    is_v6 = "v6" in kind
    try:
        vmem_cap = int(pltpu.get_tpu_info().vmem_capacity_bytes)
    except Exception:
        # Conservative fallback: 64 MiB per TensorCore on v7x, 128 MiB otherwise.
        vmem_cap = (64 if is_v7 else 128) * 2**20
    # bf16 exp only pays off where the EUP/VPU have bf16 paths (v6e / v7x); v5e stays f32.
    use_bf16_exp = is_v6 or is_v7
    return dict(kind=kind, vmem_cap=vmem_cap, use_bf16_exp=use_bf16_exp, is_v7=is_v7)


_BUFFERED_ONE = None


def _buffered_one_supported():
    """Probe whether pipeline_mode=pl.Buffered(1) (single-buffered residents) works."""
    global _BUFFERED_ONE
    if _BUFFERED_ONE is not None:
        return _BUFFERED_ONE
    try:
        def k(a_ref, b_ref, o_ref):
            o_ref[...] = a_ref[...] + b_ref[...]

        a = jnp.zeros((16, 128), jnp.float32)
        b = jnp.zeros((8, 128), jnp.float32)
        out = pl.pallas_call(
            k,
            out_shape=jax.ShapeDtypeStruct((16, 128), jnp.float32),
            grid=(2,),
            in_specs=[pl.BlockSpec((8, 128), lambda i: (i, 0)),
                      pl.BlockSpec((8, 128), lambda i: (0, 0),
                                   pipeline_mode=pl.Buffered(1))],
            out_specs=pl.BlockSpec((8, 128), lambda i: (i, 0)),
        )(a, b)
        jax.block_until_ready(out)
        _BUFFERED_ONE = True
    except Exception:
        _BUFFERED_ONE = False
    return _BUFFERED_ONE


def _resident_spec(shape):
    """Constant-index_map operand; single-buffered when the runtime supports it."""
    idx = lambda *_: tuple(0 for _ in shape)
    if _buffered_one_supported():
        return pl.BlockSpec(shape, idx, pipeline_mode=pl.Buffered(1))
    return pl.BlockSpec(shape, idx)


# --------------------------------------------------------------------------- #
# Shared math
# --------------------------------------------------------------------------- #
def _masked_layer_norm(h, gamma, beta, d_real):
    """LayerNorm over the last dim, counting only the first d_real (real) features."""
    d_pad = h.shape[-1]
    inv_d = 1.0 / float(d_real)
    if d_real != d_pad:
        mask = (lax.broadcasted_iota(jnp.int32, (1, d_pad), 1) < d_real).astype(h.dtype)
        hm = h * mask
    else:
        mask = None
        hm = h
    mu = jnp.sum(hm, axis=-1, keepdims=True) * inv_d
    diff = h - mu
    if mask is not None:
        diff = diff * mask
    var = jnp.sum(diff * diff, axis=-1, keepdims=True) * inv_d
    # gamma/beta are zero in padded columns -> padded output columns stay exactly 0.
    return (h - mu) * lax.rsqrt(var + EPS) * gamma + beta


def _tail(x, wo_ref, w1_ref, b1_ref, w2_ref, b2_ref,
          g1_ref, be1_ref, g2_ref, be2_ref, attn, d_real):
    """output projection residual half: Wo, residual+LN1, FFN, residual+LN2."""
    attn = jnp.dot(attn.astype(jnp.bfloat16), wo_ref[...],
                   preferred_element_type=jnp.float32)
    h = _masked_layer_norm(x + attn, g1_ref[...], be1_ref[...], d_real)
    ff = jnp.dot(h.astype(jnp.bfloat16), w1_ref[...],
                 preferred_element_type=jnp.float32) + b1_ref[...]
    ff = jnp.maximum(ff, 0.0)
    ff = jnp.dot(ff.astype(jnp.bfloat16), w2_ref[...],
                 preferred_element_type=jnp.float32) + b2_ref[...]
    return _masked_layer_norm(h + ff, g2_ref[...], be2_ref[...], d_real)


# --------------------------------------------------------------------------- #
# Fused single-call kernel (small / medium N): K, V computed in-kernel
# --------------------------------------------------------------------------- #
def _fused_kernel(n_real, d_real, exp_dtype,
                  x_ref, wq_ref, wk_ref, wv_ref, wo_ref,
                  w1_ref, b1_ref, w2_ref, b2_ref,
                  g1_ref, be1_ref, g2_ref, be2_ref, o_ref):
    x = x_ref[...]                                   # [n_rows, d_pad] f32
    xb = x.astype(jnp.bfloat16)

    q = jnp.dot(xb, wq_ref[...], preferred_element_type=jnp.float32).astype(jnp.bfloat16)
    k = jnp.dot(xb, wk_ref[...], preferred_element_type=jnp.float32).astype(jnp.bfloat16)
    v = jnp.dot(xb, wv_ref[...], preferred_element_type=jnp.float32).astype(jnp.bfloat16)

    # scores = Q @ K^T (transposed contraction — no explicit K transpose / XLU copy)
    scores = lax.dot_general(q, k, (((1,), (1,)), ((), ())),
                             preferred_element_type=jnp.float32)
    n_rows = x.shape[0]
    if n_real != n_rows:
        col = lax.broadcasted_iota(jnp.int32, (1, n_rows), 1)
        scores = jnp.where(col < n_real, scores, _NEG_INF)

    m = jnp.max(scores, axis=-1, keepdims=True)
    p = jnp.exp((scores - m).astype(exp_dtype))           # bf16 exp on v6e/v7x, f32 on v5e
    l = jnp.sum(p, axis=-1, keepdims=True, dtype=jnp.float32)

    attn = jnp.dot(p.astype(jnp.bfloat16), v, preferred_element_type=jnp.float32)
    attn = attn * pl.reciprocal(l, approx=True)            # normalize after the PV matmul

    out = _tail(x, wo_ref, w1_ref, b1_ref, w2_ref, b2_ref,
                g1_ref, be1_ref, g2_ref, be2_ref, attn, d_real)
    o_ref[...] = out.astype(o_ref.dtype)


# --------------------------------------------------------------------------- #
# Large-N pass 1: K / V projection (bf16 in / bf16 out, memory-bound)
# --------------------------------------------------------------------------- #
def _kv_proj_kernel(x_ref, wk_ref, wv_ref, k_ref, v_ref):
    xb = x_ref[...]                                         # already bf16
    k_ref[...] = jnp.dot(xb, wk_ref[...],
                         preferred_element_type=jnp.float32).astype(jnp.bfloat16)
    v_ref[...] = jnp.dot(xb, wv_ref[...],
                         preferred_element_type=jnp.float32).astype(jnp.bfloat16)


# --------------------------------------------------------------------------- #
# Large-N pass 2: key-tiled online softmax + residual/LN + FFN + residual/LN
# grid = (q tiles [parallel], key tiles [arbitrary])
# --------------------------------------------------------------------------- #
def _attn_ffn_tiled_kernel(n_real, d_real, n_keys_pad, exp_dtype,
                           x_ref, k_ref, v_ref,
                           wq_ref, wo_ref, w1_ref, b1_ref, w2_ref, b2_ref,
                           g1_ref, be1_ref, g2_ref, be2_ref,
                           o_ref,
                           q_sc, m_sc, l_sc, acc_sc):
    kj = pl.program_id(1)
    nk = pl.num_programs(1)

    @pl.when(kj == 0)
    def _():
        q_sc[...] = jnp.dot(x_ref[...].astype(jnp.bfloat16), wq_ref[...],
                            preferred_element_type=jnp.float32).astype(jnp.bfloat16)
        m_sc[...] = jnp.full(m_sc.shape, _NEG_INF, jnp.float32)
        l_sc[...] = jnp.zeros(l_sc.shape, jnp.float32)
        acc_sc[...] = jnp.zeros(acc_sc.shape, jnp.float32)

    # scores for this key tile: [tq, tk]
    s = lax.dot_general(q_sc[...], k_ref[...], (((1,), (1,)), ((), ())),
                        preferred_element_type=jnp.float32)
    tk = k_ref.shape[0]
    if n_real != n_keys_pad:
        col = kj * tk + lax.broadcasted_iota(jnp.int32, (1, tk), 1)
        s = jnp.where(col < n_real, s, _NEG_INF)

    m_prev = m_sc[...]
    m_new = jnp.maximum(m_prev, jnp.max(s, axis=-1, keepdims=True))
    alpha = jnp.exp(m_prev - m_new)                         # [tq,1] f32 rescale
    p = jnp.exp((s - m_new).astype(exp_dtype))              # bf16 exp on v6e/v7x, f32 on v5e
    l_sc[...] = alpha * l_sc[...] + jnp.sum(p, axis=-1, keepdims=True, dtype=jnp.float32)
    acc_sc[...] = alpha * acc_sc[...] + jnp.dot(p.astype(jnp.bfloat16), v_ref[...],
                                                preferred_element_type=jnp.float32)
    m_sc[...] = m_new

    @pl.when(kj == nk - 1)
    def _():
        attn = acc_sc[...] * pl.reciprocal(l_sc[...], approx=True)
        out = _tail(x_ref[...], wo_ref, w1_ref, b1_ref, w2_ref, b2_ref,
                    g1_ref, be1_ref, g2_ref, be2_ref, attn, d_real)
        o_ref[...] = out.astype(o_ref.dtype)


# --------------------------------------------------------------------------- #
# Parameter preparation (one-time: transpose to [in,out], pad to 128 lanes, cast bf16)
# --------------------------------------------------------------------------- #
def prepare_params(params, input_dim, hidden_dim):
    d_pad = _round_up(input_dim, 128)
    h_pad = _round_up(hidden_dim, 128)
    bf = jnp.bfloat16

    def pad2(w_t, rows, cols):   # w_t already [in, out]
        return jnp.pad(w_t, ((0, rows - w_t.shape[0]), (0, cols - w_t.shape[1])))

    def pad_row(v, cols):
        v = v.reshape(1, -1)
        return jnp.pad(v, ((0, 0), (0, cols - v.shape[-1])))

    return dict(
        d=input_dim, h=hidden_dim, d_pad=d_pad, h_pad=h_pad,
        wq=pad2(params["wq"].T, d_pad, h_pad).astype(bf),
        wk=pad2(params["wk"].T, d_pad, h_pad).astype(bf),
        wv=pad2(params["wv"].T, d_pad, h_pad).astype(bf),
        wo=pad2(params["wo"].T, h_pad, d_pad).astype(bf),
        w1=pad2(params["w1"].T, d_pad, h_pad).astype(bf),
        w2=pad2(params["w2"].T, h_pad, d_pad).astype(bf),
        b1=pad_row(params["b1"], h_pad).astype(jnp.float32),
        b2=pad_row(params["b2"], d_pad).astype(jnp.float32),
        g1=pad_row(params["g1"], d_pad).astype(jnp.float32),
        be1=pad_row(params["be1"], d_pad).astype(jnp.float32),
        g2=pad_row(params["g2"], d_pad).astype(jnp.float32),
        be2=pad_row(params["be2"], d_pad).astype(jnp.float32),
    )


def _vmem_estimate_tiled(tq, tk, d_pad, h_pad, single_buffer_residents):
    bf2, f4 = 2, 4
    wbuf = 1 if single_buffer_residents else 2
    weights = wbuf * (4 * d_pad * h_pad * bf2 + 8 * max(d_pad, h_pad) * f4)
    kv = 2 * (2 * tk * h_pad * bf2)              # K,V tiles (double-buffered pipeline)
    xio = 2 * (2 * tq * d_pad * f4)              # x tile + out tile (double-buffered)
    scores = 3 * tq * tk * f4                    # scores / exp temporaries
    scratch = tq * h_pad * (f4 + bf2) + 8 * tq * f4
    acts = 6 * tq * max(d_pad, h_pad) * f4
    return weights + kv + xio + scores + scratch + acts + 64 * 1024


# --------------------------------------------------------------------------- #
# Wrapper
# --------------------------------------------------------------------------- #
def full_attention_layer(x, prep, *, force_path=None, tq=None, tk=None):
    """x: [N, input_dim] float32. prep: output of prepare_params()."""
    n, d = x.shape
    assert d == prep["d"]
    d_pad, h_pad = prep["d_pad"], prep["h_pad"]

    hw = _hw_info()
    vmem_cap = hw["vmem_cap"]
    exp_dtype = jnp.bfloat16 if hw["use_bf16_exp"] else jnp.float32

    weight_args = (prep["wq"], prep["wo"], prep["w1"], prep["b1"], prep["w2"],
                   prep["b2"], prep["g1"], prep["be1"], prep["g2"], prep["be2"])

    # ---------------- fused single-call path (small / medium N) ----------------
    n_small = max(16, _round_up(n, 16))
    fused_bytes = (
        2 * n_small * d_pad * 4            # x in + out (f32)
        + 2 * n_small * h_pad * 2          # K, V (bf16)
        + n_small * h_pad * 4              # Q f32 temp
        + 3 * n_small * n_small * 4        # scores / exp temporaries
        + 6 * n_small * max(d_pad, h_pad) * 4
        + 6 * d_pad * h_pad * 2            # weights
        + 64 * 1024)
    use_fused = (force_path != "tiled"
                 and n_small <= 2048
                 and fused_bytes <= int(0.5 * vmem_cap))

    if use_fused:
        x_p = jnp.pad(x.astype(jnp.float32), ((0, n_small - n), (0, d_pad - d)))
        kernel = functools.partial(_fused_kernel, n, d, exp_dtype)
        vmem_limit = int(min(0.85 * vmem_cap, max(16 * 2**20, 1.5 * fused_bytes)))
        out = pl.pallas_call(
            kernel,
            out_shape=jax.ShapeDtypeStruct((n_small, d_pad), jnp.float32),
            grid=(1,),
            in_specs=[_resident_spec((n_small, d_pad)),
                      _resident_spec(prep["wq"].shape),
                      _resident_spec(prep["wk"].shape),
                      _resident_spec(prep["wv"].shape),
                      _resident_spec(prep["wo"].shape),
                      _resident_spec(prep["w1"].shape),
                      _resident_spec(prep["b1"].shape),
                      _resident_spec(prep["w2"].shape),
                      _resident_spec(prep["b2"].shape),
                      _resident_spec(prep["g1"].shape),
                      _resident_spec(prep["be1"].shape),
                      _resident_spec(prep["g2"].shape),
                      _resident_spec(prep["be2"].shape)],
            out_specs=pl.BlockSpec((n_small, d_pad), lambda i: (0, 0)),
            compiler_params=pltpu.CompilerParams(
                dimension_semantics=("arbitrary",),
                vmem_limit_bytes=vmem_limit),
        )(x_p, prep["wq"], prep["wk"], prep["wv"], prep["wo"],
          prep["w1"], prep["b1"], prep["w2"], prep["b2"],
          prep["g1"], prep["be1"], prep["g2"], prep["be2"])
        return out[:n, :d]

    # ---------------- large-N path: K/V projection + key-tiled online softmax ----------------
    # Row tiles never shrink below 128 (MXU-efficient); key axis is tiled instead,
    # so VMEM use is bounded by tile sizes, not N.
    if tq is None:
        tq = 256 if hw["is_v7"] else 512
    if tk is None:
        tk = 512
    step = tq * tk // math.gcd(tq, tk)
    n_pad = _round_up(n, step)
    # NOTE: on v7x the "parallel" q axis is sharded across the 2 TensorCores; with
    # tq=256 / tk=512 the q-grid count is always even, so neither core idles.
    nq, nk = n_pad // tq, n_pad // tk

    x_f32 = jnp.pad(x.astype(jnp.float32), ((0, n_pad - n), (0, d_pad - d)))
    x_bf16 = x_f32.astype(jnp.bfloat16)     # pass 1 is memory-bound; halve its x read

    # ---- pass 1: K / V projection ----
    k_proj, v_proj = pl.pallas_call(
        _kv_proj_kernel,
        out_shape=(jax.ShapeDtypeStruct((n_pad, h_pad), jnp.bfloat16),
                   jax.ShapeDtypeStruct((n_pad, h_pad), jnp.bfloat16)),
        grid=(n_pad // tk,),
        in_specs=[pl.BlockSpec((tk, d_pad), lambda i: (i, 0)),
                  _resident_spec(prep["wk"].shape),
                  _resident_spec(prep["wv"].shape)],
        out_specs=(pl.BlockSpec((tk, h_pad), lambda i: (i, 0)),
                   pl.BlockSpec((tk, h_pad), lambda i: (i, 0))),
        compiler_params=pltpu.CompilerParams(dimension_semantics=("parallel",)),
    )(x_bf16, prep["wk"], prep["wv"])

    # ---- pass 2: attention (online softmax over key tiles) + FFN ----
    est = _vmem_estimate_tiled(tq, tk, d_pad, h_pad, _buffered_one_supported())
    vmem_limit = int(min(0.85 * vmem_cap, max(24 * 2**20, 2.0 * est)))

    weight_specs = [_resident_spec(w.shape) for w in weight_args]
    kernel = functools.partial(_attn_ffn_tiled_kernel, n, d, n_pad, exp_dtype)
    out = pl.pallas_call(
        kernel,
        out_shape=jax.ShapeDtypeStruct((n_pad, d_pad), jnp.float32),
        grid=(nq, nk),
        in_specs=[pl.BlockSpec((tq, d_pad), lambda i, j: (i, 0)),   # x q-tile
                  pl.BlockSpec((tk, h_pad), lambda i, j: (j, 0)),   # K key-tile
                  pl.BlockSpec((tk, h_pad), lambda i, j: (j, 0))]   # V key-tile
                 + weight_specs,
        out_specs=pl.BlockSpec((tq, d_pad), lambda i, j: (i, 0)),
        scratch_shapes=[pltpu.VMEM((tq, h_pad), jnp.bfloat16),      # Q tile
                        pltpu.VMEM((tq, 1), jnp.float32),           # running max
                        pltpu.VMEM((tq, 1), jnp.float32),           # running denom
                        pltpu.VMEM((tq, h_pad), jnp.float32)],      # running PV accumulator
        compiler_params=pltpu.CompilerParams(
            dimension_semantics=("parallel", "arbitrary"),
            vmem_limit_bytes=vmem_limit),
    )(x_f32, k_proj, v_proj, *weight_args)
    return out[:n, :d]


# --------------------------------------------------------------------------- #
# References
# --------------------------------------------------------------------------- #
def full_attention_layer_ref(x, params):
    """Pure-JAX f32 reference mirroring the PyTorch forward exactly."""
    q = x @ params["wq"].T
    k = x @ params["wk"].T
    v = x @ params["wv"].T
    scores = jax.nn.softmax(q @ k.T, axis=-1)
    attn = (scores @ v) @ params["wo"].T

    def ln(h, g, b):
        mu = jnp.mean(h, -1, keepdims=True)
        var = jnp.mean((h - mu) ** 2, -1, keepdims=True)
        return (h - mu) / jnp.sqrt(var + EPS) * g + b

    h = ln(x + attn, params["g1"], params["be1"])
    ff = jnp.maximum(h @ params["w1"].T + params["b1"], 0.0) @ params["w2"].T + params["b2"]
    return ln(h + ff, params["g2"], params["be2"])


def full_attention_layer_ref_bf16(x, params):
    """Same math but with the kernel's bf16-operand / f32-accumulate matmuls."""
    bf, f32 = jnp.bfloat16, jnp.float32

    def mm(a, b):
        return lax.dot(a.astype(bf), b.astype(bf), preferred_element_type=f32)

    xf = x.astype(f32)
    q = mm(xf, params["wq"].T)
    k = mm(xf, params["wk"].T)
    v = mm(xf, params["wv"].T)
    scores = lax.dot_general(q.astype(bf), k.astype(bf),
                             (((1,), (1,)), ((), ())), preferred_element_type=f32)
    m = jnp.max(scores, -1, keepdims=True)
    p = jnp.exp(scores - m)
    l = jnp.sum(p, -1, keepdims=True)
    attn = mm(p, v) / l
    attn = mm(attn, params["wo"].T)

    def ln(h, g, b):
        mu = jnp.mean(h, -1, keepdims=True)
        var = jnp.mean((h - mu) ** 2, -1, keepdims=True)
        return (h - mu) / jnp.sqrt(var + EPS) * g + b

    h = ln(xf + attn, params["g1"], params["be1"])
    ff = jnp.maximum(mm(h, params["w1"].T) + params["b1"], 0.0)
    ff = mm(ff, params["w2"].T) + params["b2"]
    return ln(h + ff, params["g2"], params["be2"])


def init_params(key, input_dim, hidden_dim):
    ks = jax.random.split(key, 8)
    s_in = 1.0 / jnp.sqrt(input_dim)
    s_h = 1.0 / jnp.sqrt(hidden_dim)
    s_qk = 1.0 / float(input_dim)
    return dict(
        wq=jax.random.normal(ks[0], (hidden_dim, input_dim), jnp.float32) * s_qk,
        wk=jax.random.normal(ks[1], (hidden_dim, input_dim), jnp.float32) * s_qk,
        wv=jax.random.normal(ks[2], (hidden_dim, input_dim), jnp.float32) * s_in,
        wo=jax.random.normal(ks[3], (input_dim, hidden_dim), jnp.float32) * s_h,
        w1=jax.random.normal(ks[4], (hidden_dim, input_dim), jnp.float32) * s_in,
        b1=jax.random.normal(ks[5], (hidden_dim,), jnp.float32) * 0.1,
        w2=jax.random.normal(ks[6], (input_dim, hidden_dim), jnp.float32) * s_h,
        b2=jax.random.normal(ks[7], (input_dim,), jnp.float32) * 0.1,
        g1=jnp.ones((input_dim,), jnp.float32),
        be1=jnp.zeros((input_dim,), jnp.float32),
        g2=jnp.ones((input_dim,), jnp.float32),
        be2=jnp.zeros((input_dim,), jnp.float32),
    )


if __name__ == "__main__":
    key = jax.random.PRNGKey(0)
    kx, kp, kx2 = jax.random.split(key, 3)

    seq, input_dim, hidden_dim = 12, 32, 64   # exercises row + feature padding
    x = jax.random.normal(kx, (seq, input_dim), jnp.float32)
    params = init_params(kp, input_dim, hidden_dim)
    prep = prepare_params(params, input_dim, hidden_dim)   # one-time glue (not per call)

    # Small problem -> fused single-pallas_call path.
    out = jax.block_until_ready(full_attention_layer(x, prep))
    assert out.shape == (seq, input_dim)
    ref_bf16 = full_attention_layer_ref_bf16(x, params)
    assert jnp.allclose(out, ref_bf16, atol=5e-2, rtol=5e-2), "fused: mismatch vs bf16 reference"
    ref_f32 = full_attention_layer_ref(x, params)
    assert jnp.allclose(out, ref_f32, atol=0.2, rtol=0.2), "fused: mismatch vs f32 reference"

    # Exercise the large-N key-tiled online-softmax path at a small, cheap size.
    seq2 = 300
    x2 = jax.random.normal(kx2, (seq2, input_dim), jnp.float32)
    out2 = jax.block_until_ready(
        full_attention_layer(x2, prep, force_path="tiled", tq=128, tk=128))
    assert out2.shape == (seq2, input_dim)
    ref2 = full_attention_layer_ref_bf16(x2, params)
    assert jnp.allclose(out2, ref2, atol=5e-2, rtol=5e-2), "tiled: mismatch vs bf16 reference"

    print("KERNEL_OK")
</pallas_src>

<mosaic_0001>
module attributes {stable_mosaic.version = 11 : i64} {
  func.func @k(%arg0: i32, %arg1: memref<8x128xf32, #tpu.memory_space<vmem>>, %arg2: memref<8x128xf32, #tpu.memory_space<vmem>>, %arg3: memref<8x128xf32, #tpu.memory_space<vmem>>) attributes {dimension_semantics = [#tpu.dimension_semantics<arbitrary>], iteration_bounds = array<i64: 2>, scalar_prefetch = 0 : i64, scratch_operands = 0 : i64, tpu.core_type = #tpu.core_type<tc>, window_params = [{transform_indices = @transform_0, window_bounds = array<i64: 8, 128>}, {pipeline_mode = #tpu.pipeline_mode<synchronous>, transform_indices = @transform_1, window_bounds = array<i64: 8, 128>}, {transform_indices = @transform_2, window_bounds = array<i64: 8, 128>}]} {
    %c0 = arith.constant 0 : index
    %c0_0 = arith.constant 0 : index
    %0 = vector.load %arg1[%c0, %c0_0] : memref<8x128xf32, #tpu.memory_space<vmem>>, vector<8x128xf32>
    %c0_1 = arith.constant 0 : index
    %c0_2 = arith.constant 0 : index
    %1 = vector.load %arg2[%c0_1, %c0_2] : memref<8x128xf32, #tpu.memory_space<vmem>>, vector<8x128xf32>
    %2 = arith.addf %0, %1 : vector<8x128xf32>
    %c0_3 = arith.constant 0 : index
    %c0_4 = arith.constant 0 : index
    %3 = vector.load %arg3[%c0_3, %c0_4] : memref<8x128xf32, #tpu.memory_space<vmem>>, vector<8x128xf32>
    tpu.vector_store %arg3[%c0_3, %c0_4], %2 {strides = array<i32>} : memref<8x128xf32, #tpu.memory_space<vmem>>, vector<8x128xf32>,
    return
  }
  func.func @transform_0(%arg0: i32) -> (i32, i32) {
    %c0_i32 = arith.constant 0 : i32
    %c0_i32_0 = arith.constant 0 : i32
    return %arg0, %c0_i32 : i32, i32
  }
  func.func @transform_1(%arg0: i32) -> (i32, i32) {
    %c0_i32 = arith.constant 0 : i32
    %c0_i32_0 = arith.constant 0 : i32
    %c0_i32_1 = arith.constant 0 : i32
    return %c0_i32, %c0_i32_0 : i32, i32
  }
  func.func @transform_2(%arg0: i32) -> (i32, i32) {
    %c0_i32 = arith.constant 0 : i32
    %c0_i32_0 = arith.constant 0 : i32
    return %arg0, %c0_i32 : i32, i32
  }
}

module attributes {stable_mosaic.version = 11 : i64} {
  func.func @_fused_kernel(%arg0: i32, %arg1: memref<16x128xf32, #tpu.memory_space<vmem>>, %arg2: memref<128x128xbf16, #tpu.memory_space<vmem>>, %arg3: memref<128x128xbf16, #tpu.memory_space<vmem>>, %arg4: memref<128x128xbf16, #tpu.memory_space<vmem>>, %arg5: memref<128x128xbf16, #tpu.memory_space<vmem>>, %arg6: memref<128x128xbf16, #tpu.memory_space<vmem>>, %arg7: memref<1x128xf32, #tpu.memory_space<vmem>>, %arg8: memref<128x128xbf16, #tpu.memory_space<vmem>>, %arg9: memref<1x128xf32, #tpu.memory_space<vmem>>, %arg10: memref<1x128xf32, #tpu.memory_space<vmem>>, %arg11: memref<1x128xf32, #tpu.memory_space<vmem>>, %arg12: memref<1x128xf32, #tpu.memory_space<vmem>>, %arg13: memref<1x128xf32, #tpu.memory_space<vmem>>, %arg14: memref<16x128xf32, #tpu.memory_space<vmem>>) attributes {dimension_semantics = [#tpu.dimension_semantics<arbitrary>], iteration_bounds = array<i64: 1>, scalar_prefetch = 0 : i64, scratch_operands = 0 : i64, tpu.core_type = #tpu.core_type<tc>, window_params = [{pipeline_mode = #tpu.pipeline_mode<synchronous>, transform_indices = @transform_0, window_bounds = array<i64: 16, 128>}, {pipeline_mode = #tpu.pipeline_mode<synchronous>, transform_indices = @transform_1, window_bounds = array<i64: 128, 128>}, {pipeline_mode = #tpu.pipeline_mode<synchronous>, transform_indices = @transform_2, window_bounds = array<i64: 128, 128>}, {pipeline_mode = #tpu.pipeline_mode<synchronous>, transform_indices = @transform_3, window_bounds = array<i64: 128, 128>}, {pipeline_mode = #tpu.pipeline_mode<synchronous>, transform_indices = @transform_4, window_bounds = array<i64: 128, 128>}, {pipeline_mode = #tpu.pipeline_mode<synchronous>, transform_indices = @transform_5, window_bounds = array<i64: 128, 128>}, {pipeline_mode = #tpu.pipeline_mode<synchronous>, transform_indices = @transform_6, window_bounds = array<i64: 1, 128>}, {pipeline_mode = #tpu.pipeline_mode<synchronous>, transform_indices = @transform_7, window_bounds = array<i64: 128, 128>}, {pipeline_mode = #tpu.pipeline_mode<synchronous>, transform_indices = @transform_8, window_bounds = array<i64: 1, 128>}, {pipeline_mode = #tpu.pipeline_mode<synchronous>, transform_indices = @transform_9, window_bounds = array<i64: 1, 128>}, {pipeline_mode = #tpu.pipeline_mode<synchronous>, transform_indices = @transform_10, window_bounds = array<i64: 1, 128>}, {pipeline_mode = #tpu.pipeline_mode<synchronous>, transform_indices = @transform_11, window_bounds = array<i64: 1, 128>}, {pipeline_mode = #tpu.pipeline_mode<synchronous>, transform_indices = @transform_12, window_bounds = array<i64: 1, 128>}, {pipeline_mode = #tpu.pipeline_mode<synchronous>, transform_indices = @transform_13, window_bounds = array<i64: 16, 128>}]} {
    %c0 = arith.constant 0 : index
    %c0_0 = arith.constant 0 : index
    %0 = vector.load %arg1[%c0, %c0_0] : memref<16x128xf32, #tpu.memory_space<vmem>>, vector<16x128xf32>
    %1 = arith.truncf %0 : vector<16x128xf32> to vector<16x128xbf16>
    %c0_1 = arith.constant 0 : index
    %c0_2 = arith.constant 0 : index
    %2 = vector.load %arg2[%c0_1, %c0_2] : memref<128x128xbf16, #tpu.memory_space<vmem>>, vector<128x128xbf16>
    %cst = arith.constant dense<0.000000e+00> : vector<16x128xf32>
    %3 = tpu.matmul %1, %2, %cst {dimension_numbers = #tpu.dot_dimension_numbers<[1], [0], [0], [1], [0, 0, 1, 1], [], []>} : vector<16x128xbf16>, vector<128x128xbf16>, vector<16x128xf32> -> vector<16x128xf32>
    %4 = arith.truncf %3 : vector<16x128xf32> to vector<16x128xbf16>
    %c0_3 = arith.constant 0 : index
    %c0_4 = arith.constant 0 : index
    %5 = vector.load %arg3[%c0_3, %c0_4] : memref<128x128xbf16, #tpu.memory_space<vmem>>, vector<128x128xbf16>
    %cst_5 = arith.constant dense<0.000000e+00> : vector<16x128xf32>
    %6 = tpu.matmul %1, %5, %cst_5 {dimension_numbers = #tpu.dot_dimension_numbers<[1], [0], [0], [1], [0, 0, 1, 1], [], []>} : vector<16x128xbf16>, vector<128x128xbf16>, vector<16x128xf32> -> vector<16x128xf32>
    %7 = arith.truncf %6 : vector<16x128xf32> to vector<16x128xbf16>
    %c0_6 = arith.constant 0 : index
    %c0_7 = arith.constant 0 : index
    %8 = vector.load %arg4[%c0_6, %c0_7] : memref<128x128xbf16, #tpu.memory_space<vmem>>, vector<128x128xbf16>
    %cst_8 = arith.constant dense<0.000000e+00> : vector<16x128xf32>
    %9 = tpu.matmul %1, %8, %cst_8 {dimension_numbers = #tpu.dot_dimension_numbers<[1], [0], [0], [1], [0, 0, 1, 1], [], []>} : vector<16x128xbf16>, vector<128x128xbf16>, vector<16x128xf32> -> vector<16x128xf32>
    %10 = arith.truncf %9 : vector<16x128xf32> to vector<16x128xbf16>
    %cst_9 = arith.constant dense<0.000000e+00> : vector<16x16xf32>
    %11 = tpu.matmul %4, %7, %cst_9 {dimension_numbers = #tpu.dot_dimension_numbers<[1], [1], [0], [0], [0, 0, 1, 0], [], []>} : vector<16x128xbf16>, vector<16x128xbf16>, vector<16x16xf32> -> vector<16x16xf32>
    %12 = tpu.iota {dimensions = array<i32: 1>} : vector<1x16xi32>
    %c12_i32 = arith.constant 12 : i32
    %13 = vector.broadcast %c12_i32 : i32 to vector<1x16xi32>
    %14 = arith.cmpi slt, %12, %13 : vector<1x16xi32>
    %cst_10 = arith.constant -1.000000e+30 : f32
    %15 = vector.shape_cast %14 : vector<1x16xi1> to vector<1x16xi1>
    %16 = vector.broadcast %15 : vector<1x16xi1> to vector<16x16xi1>
    %17 = vector.broadcast %cst_10 : f32 to vector<16x16xf32>
    %18 = arith.select %16, %11, %17 : vector<16x16xi1>, vector<16x16xf32>
    %cst_11 = arith.constant dense<0xFF800000> : vector<16xf32>
    %19 = vector.multi_reduction <maximumf>, %18, %cst_11 [1] : vector<16x16xf32> to vector<16xf32>
    %20 = vector.shape_cast %19 : vector<16xf32> to vector<16x1xf32>
    %21 = vector.broadcast %20 : vector<16x1xf32> to vector<16x16xf32>
    %22 = arith.subf %18, %21 : vector<16x16xf32>
    %23 = math.exp %22 : vector<16x16xf32>
    %cst_12 = arith.constant dense<0.000000e+00> : vector<16xf32>
    %24 = vector.multi_reduction <add>, %23, %cst_12 [1] : vector<16x16xf32> to vector<16xf32>
    %25 = vector.shape_cast %24 : vector<16xf32> to vector<16x1xf32>
    %26 = arith.truncf %23 : vector<16x16xf32> to vector<16x16xbf16>
    %cst_13 = arith.constant dense<0.000000e+00> : vector<16x128xf32>
    %27 = tpu.matmul %26, %10, %cst_13 {dimension_numbers = #tpu.dot_dimension_numbers<[1], [0], [0], [1], [0, 0, 1, 1], [], []>} : vector<16x16xbf16>, vector<16x128xbf16>, vector<16x128xf32> -> vector<16x128xf32>
    %28 = tpu.reciprocal %25 {approx = true} : vector<16x1xf32> -> vector<16x1xf32>
    %29 = vector.broadcast %28 : vector<16x1xf32> to vector<16x128xf32>
    %30 = arith.mulf %27, %29 : vector<16x128xf32>
    %31 = arith.truncf %30 : vector<16x128xf32> to vector<16x128xbf16>
    %c0_14 = arith.constant 0 : index
    %c0_15 = arith.constant 0 : index
    %32 = vector.load %arg5[%c0_14, %c0_15] : memref<128x128xbf16, #tpu.memory_space<vmem>>, vector<128x128xbf16>
    %cst_16 = arith.constant dense<0.000000e+00> : vector<16x128xf32>
    %33 = tpu.matmul %31, %32, %cst_16 {dimension_numbers = #tpu.dot_dimension_numbers<[1], [0], [0], [1], [0, 0, 1, 1], [], []>} : vector<16x128xbf16>, vector<128x128xbf16>, vector<16x128xf32> -> vector<16x128xf32>
    %34 = arith.addf %0, %33 : vector<16x128xf32>
    %c0_17 = arith.constant 0 : index
    %c0_18 = arith.constant 0 : index
    %35 = vector.load %arg10[%c0_17, %c0_18] : memref<1x128xf32, #tpu.memory_space<vmem>>, vector<1x128xf32>
    %c0_19 = arith.constant 0 : index
    %c0_20 = arith.constant 0 : index
    %36 = vector.load %arg11[%c0_19, %c0_20] : memref<1x128xf32, #tpu.memory_space<vmem>>, vector<1x128xf32>
    %37 = tpu.iota {dimensions = array<i32: 1>} : vector<1x128xi32>
    %c32_i32 = arith.constant 32 : i32
    %38 = vector.broadcast %c32_i32 : i32 to vector<1x128xi32>
    %39 = arith.cmpi slt, %37, %38 : vector<1x128xi32>
    %40 = arith.extui %39 : vector<1x128xi1> to vector<1x128xi32>
    %41 = arith.sitofp %40 : vector<1x128xi32> to vector<1x128xf32>
    %42 = vector.broadcast %41 : vector<1x128xf32> to vector<16x128xf32>
    %43 = arith.mulf %34, %42 : vector<16x128xf32>
    %cst_21 = arith.constant dense<0.000000e+00> : vector<16xf32>
    %44 = vector.multi_reduction <add>, %43, %cst_21 [1] : vector<16x128xf32> to vector<16xf32>
    %45 = vector.shape_cast %44 : vector<16xf32> to vector<16x1xf32>
    %cst_22 = arith.constant 3.125000e-02 : f32
    %46 = vector.broadcast %cst_22 : f32 to vector<16x1xf32>
    %47 = arith.mulf %45, %46 : vector<16x1xf32>
    %48 = vector.broadcast %47 : vector<16x1xf32> to vector<16x128xf32>
    %49 = arith.subf %34, %48 : vector<16x128xf32>
    %50 = vector.broadcast %41 : vector<1x128xf32> to vector<16x128xf32>
    %51 = arith.mulf %49, %50 : vector<16x128xf32>
    %52 = arith.mulf %51, %51 : vector<16x128xf32>
    %cst_23 = arith.constant dense<0.000000e+00> : vector<16xf32>
    %53 = vector.multi_reduction <add>, %52, %cst_23 [1] : vector<16x128xf32> to vector<16xf32>
    %54 = vector.shape_cast %53 : vector<16xf32> to vector<16x1xf32>
    %cst_24 = arith.constant 3.125000e-02 : f32
    %55 = vector.broadcast %cst_24 : f32 to vector<16x1xf32>
    %56 = arith.mulf %54, %55 : vector<16x1xf32>
    %57 = vector.broadcast %47 : vector<16x1xf32> to vector<16x128xf32>
    %58 = arith.subf %34, %57 : vector<16x128xf32>
    %cst_25 = arith.constant 9.99999974E-6 : f32
    %59 = vector.broadcast %cst_25 : f32 to vector<16x1xf32>
    %60 = arith.addf %56, %59 : vector<16x1xf32>
    %61 = math.rsqrt %60 : vector<16x1xf32>
    %62 = vector.broadcast %61 : vector<16x1xf32> to vector<16x128xf32>
    %63 = arith.mulf %58, %62 : vector<16x128xf32>
    %64 = vector.broadcast %35 : vector<1x128xf32> to vector<16x128xf32>
    %65 = arith.mulf %63, %64 : vector<16x128xf32>
    %66 = vector.broadcast %36 : vector<1x128xf32> to vector<16x128xf32>
    %67 = arith.addf %65, %66 : vector<16x128xf32>
    %68 = arith.truncf %67 : vector<16x128xf32> to vector<16x128xbf16>
    %c0_26 = arith.constant 0 : index
    %c0_27 = arith.constant 0 : index
    %69 = vector.load %arg6[%c0_26, %c0_27] : memref<128x128xbf16, #tpu.memory_space<vmem>>, vector<128x128xbf16>
    %cst_28 = arith.constant dense<0.000000e+00> : vector<16x128xf32>
    %70 = tpu.matmul %68, %69, %cst_28 {dimension_numbers = #tpu.dot_dimension_numbers<[1], [0], [0], [1], [0, 0, 1, 1], [], []>} : vector<16x128xbf16>, vector<128x128xbf16>, vector<16x128xf32> -> vector<16x128xf32>
    %c0_29 = arith.constant 0 : index
    %c0_30 = arith.constant 0 : index
    %71 = vector.load %arg7[%c0_29, %c0_30] : memref<1x128xf32, #tpu.memory_space<vmem>>, vector<1x128xf32>
    %72 = vector.broadcast %71 : vector<1x128xf32> to vector<16x128xf32>
    %73 = arith.addf %70, %72 : vector<16x128xf32>
    %cst_31 = arith.constant 0.000000e+00 : f32
    %74 = vector.broadcast %cst_31 : f32 to vector<16x128xf32>
    %75 = arith.maximumf %73, %74 : vector<16x128xf32>
    %76 = arith.truncf %75 : vector<16x128xf32> to vector<16x128xbf16>
    %c0_32 = arith.constant 0 : index
    %c0_33 = arith.constant 0 : index
    %77 = vector.load %arg8[%c0_32, %c0_33] : memref<128x128xbf16, #tpu.memory_space<vmem>>, vector<128x128xbf16>
    %cst_34 = arith.constant dense<0.000000e+00> : vector<16x128xf32>
    %78 = tpu.matmul %76, %77, %cst_34 {dimension_numbers = #tpu.dot_dimension_numbers<[1], [0], [0], [1], [0, 0, 1, 1], [], []>} : vector<16x128xbf16>, vector<128x128xbf16>, vector<16x128xf32> -> vector<16x128xf32>
    %c0_35 = arith.constant 0 : index
    %c0_36 = arith.constant 0 : index
    %79 = vector.load %arg9[%c0_35, %c0_36] : memref<1x128xf32, #tpu.memory_space<vmem>>, vector<1x128xf32>
    %80 = vector.broadcast %79 : vector<1x128xf32> to vector<16x128xf32>
    %81 = arith.addf %78, %80 : vector<16x128xf32>
    %82 = arith.addf %67, %81 : vector<16x128xf32>
    %c0_37 = arith.constant 0 : index
    %c0_38 = arith.constant 0 : index
    %83 = vector.load %arg12[%c0_37, %c0_38] : memref<1x128xf32, #tpu.memory_space<vmem>>, vector<1x128xf32>
    %c0_39 = arith.constant 0 : index
    %c0_40 = arith.constant 0 : index
    %84 = vector.load %arg13[%c0_39, %c0_40] : memref<1x128xf32, #tpu.memory_space<vmem>>, vector<1x128xf32>
    %85 = tpu.iota {dimensions = array<i32: 1>} : vector<1x128xi32>
    %c32_i32_41 = arith.constant 32 : i32
    %86 = vector.broadcast %c32_i32_41 : i32 to vector<1x128xi32>
    %87 = arith.cmpi slt, %85, %86 : vector<1x128xi32>
    %88 = arith.extui %87 : vector<1x128xi1> to vector<1x128xi32>
    %89 = arith.sitofp %88 : vector<1x128xi32> to vector<1x128xf32>
    %90 = vector.broadcast %89 : vector<1x128xf32> to vector<16x128xf32>
    %91 = arith.mulf %82, %90 : vector<16x128xf32>
    %cst_42 = arith.constant dense<0.000000e+00> : vector<16xf32>
    %92 = vector.multi_reduction <add>, %91, %cst_42 [1] : vector<16x128xf32> to vector<16xf32>
    %93 = vector.shape_cast %92 : vector<16xf32> to vector<16x1xf32>
    %cst_43 = arith.constant 3.125000e-02 : f32
    %94 = vector.broadcast %cst_43 : f32 to vector<16x1xf32>
    %95 = arith.mulf %93, %94 : vector<16x1xf32>
    %96 = vector.broadcast %95 : vector<16x1xf32> to vector<16x128xf32>
    %97 = arith.subf %82, %96 : vector<16x128xf32>
    %98 = vector.broadcast %89 : vector<1x128xf32> to vector<16x128xf32>
    %99 = arith.mulf %97, %98 : vector<16x128xf32>
    %100 = arith.mulf %99, %99 : vector<16x128xf32>
    %cst_44 = arith.constant dense<0.000000e+00> : vector<16xf32>
    %101 = vector.multi_reduction <add>, %100, %cst_44 [1] : vector<16x128xf32> to vector<16xf32>
    %102 = vector.shape_cast %101 : vector<16xf32> to vector<16x1xf32>
    %cst_45 = arith.constant 3.125000e-02 : f32
    %103 = vector.broadcast %cst_45 : f32 to vector<16x1xf32>
    %104 = arith.mulf %102, %103 : vector<16x1xf32>
    %105 = vector.broadcast %95 : vector<16x1xf32> to vector<16x128xf32>
    %106 = arith.subf %82, %105 : vector<16x128xf32>
    %cst_46 = arith.constant 9.99999974E-6 : f32
    %107 = vector.broadcast %cst_46 : f32 to vector<16x1xf32>
    %108 = arith.addf %104, %107 : vector<16x1xf32>
    %109 = math.rsqrt %108 : vector<16x1xf32>
    %110 = vector.broadcast %109 : vector<16x1xf32> to vector<16x128xf32>
    %111 = arith.mulf %106, %110 : vector<16x128xf32>
    %112 = vector.broadcast %83 : vector<1x128xf32> to vector<16x128xf32>
    %113 = arith.mulf %111, %112 : vector<16x128xf32>
    %114 = vector.broadcast %84 : vector<1x128xf32> to vector<16x128xf32>
    %115 = arith.addf %113, %114 : vector<16x128xf32>
    %c0_47 = arith.constant 0 : index
    %c0_48 = arith.constant 0 : index
    %116 = vector.load %arg14[%c0_47, %c0_48] : memref<16x128xf32, #tpu.memory_space<vmem>>, vector<16x128xf32>
    tpu.vector_store %arg14[%c0_47, %c0_48], %115 {strides = array<i32>} : memref<16x128xf32, #tpu.memory_space<vmem>>, vector<16x128xf32>,
    return
  }
  func.func @transform_0(%arg0: i32) -> (i32, i32) {
    %c0_i32 = arith.constant 0 : i32
    %c0_i32_0 = arith.constant 0 : i32
    %c0_i32_1 = arith.constant 0 : i32
    return %c0_i32, %c0_i32_0 : i32, i32
  }
  func.func @transform_1(%arg0: i32) -> (i32, i32) {
    %c0_i32 = arith.constant 0 : i32
    %c0_i32_0 = arith.constant 0 : i32
    %c0_i32_1 = arith.constant 0 : i32
    return %c0_i32, %c0_i32_0 : i32, i32
  }
  func.func @transform_2(%arg0: i32) -> (i32, i32) {
    %c0_i32 = arith.constant 0 : i32
    %c0_i32_0 = arith.constant 0 : i32
    %c0_i32_1 = arith.constant 0 : i32
    return %c0_i32, %c0_i32_0 : i32, i32
  }
  func.func @transform_3(%arg0: i32) -> (i32, i32) {
    %c0_i32 = arith.constant 0 : i32
    %c0_i32_0 = arith.constant 0 : i32
    %c0_i32_1 = arith.constant 0 : i32
    return %c0_i32, %c0_i32_0 : i32, i32
  }
  func.func @transform_4(%arg0: i32) -> (i32, i32) {
    %c0_i32 = arith.constant 0 : i32
    %c0_i32_0 = arith.constant 0 : i32
    %c0_i32_1 = arith.constant 0 : i32
    return %c0_i32, %c0_i32_0 : i32, i32
  }
  func.func @transform_5(%arg0: i32) -> (i32, i32) {
    %c0_i32 = arith.constant 0 : i32
    %c0_i32_0 = arith.constant 0 : i32
    %c0_i32_1 = arith.constant 0 : i32
    return %c0_i32, %c0_i32_0 : i32, i32
  }
  func.func @transform_6(%arg0: i32) -> (i32, i32) {
    %c0_i32 = arith.constant 0 : i32
    %c0_i32_0 = arith.constant 0 : i32
    %c0_i32_1 = arith.constant 0 : i32
    return %c0_i32, %c0_i32_0 : i32, i32
  }
  func.func @transform_7(%arg0: i32) -> (i32, i32) {
    %c0_i32 = arith.constant 0 : i32
    %c0_i32_0 = arith.constant 0 : i32
    %c0_i32_1 = arith.constant 0 : i32
    return %c0_i32, %c0_i32_0 : i32, i32
  }
  func.func @transform_8(%arg0: i32) -> (i32, i32) {
    %c0_i32 = arith.constant 0 : i32
    %c0_i32_0 = arith.constant 0 : i32
    %c0_i32_1 = arith.constant 0 : i32
    return %c0_i32, %c0_i32_0 : i32, i32
  }
  func.func @transform_9(%arg0: i32) -> (i32, i32) {
    %c0_i32 = arith.constant 0 : i32
    %c0_i32_0 = arith.constant 0 : i32
    %c0_i32_1 = arith.constant 0 : i32
    return %c0_i32, %c0_i32_0 : i32, i32
  }
  func.func @transform_10(%arg0: i32) -> (i32, i32) {
    %c0_i32 = arith.constant 0 : i32
    %c0_i32_0 = arith.constant 0 : i32
    %c0_i32_1 = arith.constant 0 : i32
    return %c0_i32, %c0_i32_0 : i32, i32
  }
  func.func @transform_11(%arg0: i32) -> (i32, i32) {
    %c0_i32 = arith.constant 0 : i32
    %c0_i32_0 = arith.constant 0 : i32
    %c0_i32_1 = arith.constant 0 : i32
    return %c0_i32, %c0_i32_0 : i32, i32
  }
  func.func @transform_12(%arg0: i32) -> (i32, i32) {
    %c0_i32 = arith.constant 0 : i32
    %c0_i32_0 = arith.constant 0 : i32
    %c0_i32_1 = arith.constant 0 : i32
    return %c0_i32, %c0_i32_0 : i32, i32
  }
  func.func @transform_13(%arg0: i32) -> (i32, i32) {
    %c0_i32 = arith.constant 0 : i32
    %c0_i32_0 = arith.constant 0 : i32
    %c0_i32_1 = arith.constant 0 : i32
    return %c0_i32, %c0_i32_0 : i32, i32
  }
}

</mosaic_0001>

<bundles_post_ra>
// kernel: tpu_custom_call.1
= control target key start
LH: loop header
LB: loop body
LE: loop exit
PB: predicated region body
PF: predicated region fallthrough
CT: control target
= control target key end

     0   :  { %7 = vsyncpa [#allocation3], 0  ;;  %s633_s0 = inlined_call_operand.hbm [shape: f32[16,128], index: 0, kind: input, shape index: {}]   ;;  %s634_s1 = inlined_call_operand.hbm [shape: f32[8,128], index: 1, kind: input, shape index: {}]   ;;  %s635_s2 = inlined_call_operand.hbm [shape: f32[16,128], index: 2, kind: output, shape index: {}]  }
   0x1   :  { %9 = vsyncpa [#allocation3 + $0x1], 0 }
   0x2   :  { %10 = vsyncpa [#allocation6], 0 }
   0x3   :  { %11 = vsyncpa [#allocation4], 0 }
   0x4   :  { %13 = vsyncpa [#allocation4 + $0x1], 0  ;;  %s495_s9 = smov 0   ;;  %s497_s10 = smov 0  }
   0x5   :  { %s499_s11 = smov 0   ;;  %s501_s12 = smov 0  }
   0x6 LB: > { %s516_s13 = sadd.s32 4294967295, %s477_s12   ;;  %s276_s14 = sadd.s32 4294967294, %s477_s12   ;;  %s477_s12 = sphi %s501_s12, %s645_s12   ;;  %s473_s11 = sphi %s499_s11, %s644_s11   ;;  %s469_s10 = sphi %s497_s10, %s643_s10   ;;  %s465_s9 = sphi %s495_s9, %s642_s9  }
   0x7   : > { %p39_p0 = scmp.ne.s32.totalorder %s469_s10, %s465_s9  ;;  %p40_p1 = scmp.eq.s32.totalorder %s516_s13, 0 }
   0x8   : > { %p84_p2 = scmp.eq.s32.totalorder %s516_s13, 1  ;;  %p90_p3 = scmp.eq.s32.totalorder %s276_s14, 1 }
   0x9   : > { %p525_p4 = por %p40_p1, %p39_p0  ;;  %p277_p5 = scmp.ge.s32.totalorder %s477_s12, 1 }
   0xa   : > { %p530_p6 = por %p90_p3, %p39_p0  ;;  %p97_p7 = scmp.lt.s32.totalorder %s477_s12, 3 }
   0xb   : > { %s109_s19 = sshll.u32 %s634_s1, 4  ;;  %s479_s21 = smov [#allocation5]   ;;  %s110_s19 = int_to_ptr.hbm [resolvable:$true] %s109_s19 }
   0xc   : > { %p538_p8 = pnand %p277_p5, %p97_p7  ;;  %s111_s22 = sshll.u32 %s479_s21, 4  ;;  %s112_s22 = int_to_ptr.vmem [resolvable:$true] %s111_s22 }
   0xd   : > { %s548_s23 = sadd.s32 1, %s477_s12   ;;  %s26_s24 = sadd.s32 1, %s473_s11 }
   0xe   : > { %p298_p10 = pneg %p538_p8  ;;  %s23_s25 = ssub.s32 %s477_s12, %s548_s23 }
   0xf   : > { %p24_p12 = scmp.eq.s32.totalorder %s23_s25, 0  ;;  %p33_p13 = scmp.ne.s32.totalorder %s473_s11, %s469_s10 }
  0x10   : > { %p299_p11 = pnand %p298_p10, %p40_p1  ;;  %p34_p0 = scmp.eq.s32.totalorder %s477_s12, 0 }
  0x11   : > { %s557_s26 = scalar_select %p24_p12, %s473_s11, %s26_s24  }
  0x12   : > { %301 = dma.hbm_to_vmem [thread:$0]  (!%p299_p11), %s110_s19, 128, %s112_s22, [#allocation6]  }
  0x13   : > { %p561_p3 = por %p84_p2, %p33_p13  ;;  %p311_p5 = scmp.lt.s32.totalorder %s477_s12, 2 }
  0x14   : > { %s122_s28 = sand.u32 1, %s473_s11   ;;  %s281_s29 = sshll.u32 %s477_s12, 3 }
  0x15   : > { %p35_p7 = por %p34_p0, %p33_p13  ;;  %s280_s30 = sshll.u32 %s122_s28, 3 }
  0x16   : > { %s130_s5 = scalar_lea.hbm %s633_s0, %s281_s29  ;;  %s126_s7 = scalar_lea.vmem [#allocation2], %s280_s30 }
  0x17   : > { %s132_s6 = sshll.u32 %s130_s5, 4  ;;  %s134_s8 = sshll.u32 %s126_s7, 4  ;;  %s133_s6 = int_to_ptr.hbm [resolvable:$true] %s132_s6  ;;  %s135_s8 = int_to_ptr.vmem [resolvable:$true] %s134_s8 }
  0x18   : > { %p571_p10 = pnand %p311_p5, %p35_p7  ;;  %s123_s17 = scalar_lea.sflag [#allocation3], %s122_s28 }
  0x19   : > { %s377_s18 = sshra.s32 %s133_s6, 4  ;;  %s384_s24 = scalar_lea.hbm %s633_s0, 16  ;;  %s378_s18 = int_to_ptr.hbm [resolvable:$true] %s377_s18 }
  0x1a   : > { %s379_s19 = scalar_lea.hbm %s378_s18, 8  ;;  %p381_p11 = pneg %p571_p10 }
  0x1b   : > { %p380_p2 = scmp.ne.s32.totalorder %s378_s18, %s379_s19  ;;  %p385_p0 = scmp.lt.s32.totalorder %s378_s18, %s633_s0 }
  0x1c   : > { %p386_p5 = scmp.lt.s32.totalorder %s384_s24, %s379_s19 }
  0x1d   : > { %p382_p12 = pnand %p381_p11, %p380_p2 }
  0x1e   : > { %p387_p7 = por %p386_p5, %p385_p0 }
  0x1f   : > { %p383_p13 = pneg %p382_p12 }
  0x21   : > { %p388_p9 = pnand %p387_p7, %p383_p13 }
  0x23   : > { %391 = shalt.err (!%p388_p9)
}
  0x24   : > { %305 = dma.hbm_to_vmem [thread:$0]  (!%p571_p10), %s133_s6, 128, %s135_s8, %s123_s17  }
  0x25   : > { %143 = sbr.rel (%p538_p8) target bundleno = 60 (0x3c), region = 28  ;;  %s588_s28 = sand.u32 (!%p538_p8), 1, %s469_s10  }
  0x26   : > { %s283_s30 = sshll.u32 (!%p538_p8), %s588_s28, 3  ;;  %s146_s3 = scalar_lea.sflag (!%p538_p8), [#allocation3], %s588_s28 }
  0x27   : > { %s149_s4 = scalar_lea.vmem (!%p538_p8), [#allocation2], %s283_s30 }
  0x2a   : > { %452 = dma.done.wait (%p525_p4), %s146_s3, 128  }
  0x2b   : > { %454 = vsyncadd (%p525_p4), %s146_s3, 4294967168 }
  0x2c   : > { %456 = dma.done.wait (%p40_p1), [#allocation6], 128  }
  0x2d   : > { %458 = vsyncadd (%p40_p1), [#allocation6], 4294967168  ;;  %s287_s20 = sshll.u32 %s516_s13, 3  ;;  %s175_s8 = scalar_lea.vmem [#allocation7], %s283_s30  ;;  %v176_v0 = vld [vmem:[%s149_s4] sm:$0xff]  ;;  %v177_v1 = vld [vmem:[#allocation5] sm:$0xff] }
  0x2e   : > { %s191_s7 = scalar_lea.hbm %s635_s2, %s287_s20  ;;  %s193_s14 = sshll.u32 %s175_s8, 4  ;;  %v178_v2 = vadd.f32 %v177_v1, %v176_v0  ;;  %s194_s14 = int_to_ptr.vmem [resolvable:$true] %s193_s14 }
  0x2f   : > { %s195_s17 = sshll.u32 %s191_s7, 4  ;;  %s181_s15 = scalar_lea.sflag [#allocation4], %s588_s28  ;;  %s196_s17 = int_to_ptr.hbm [resolvable:$true] %s195_s17 }
  0x30   : > { %179 = vst [vmem:[%s175_s8] sm:$0xff] %v178_v2  ;;  %s421_s18 = sshra.s32 %s196_s17, 4  ;;  %s427_s22 = scalar_lea.hbm %s635_s2, 16  ;;  %s422_s18 = int_to_ptr.hbm [resolvable:$true] %s421_s18 }
  0x31   : > { %s423_s19 = scalar_lea.hbm %s422_s18, 8  ;;  %p428_p9 = scmp.lt.s32.totalorder %s422_s18, %s635_s2 }
  0x32   : > { %p424_p1 = scmp.ne.s32.totalorder %s422_s18, %s423_s19  ;;  %p429_p10 = scmp.lt.s32.totalorder %s427_s22, %s423_s19 }
  0x34   : > { %p425_p4 = pnand %p424_p1, %p561_p3  ;;  %p430_p2 = por %p429_p10, %p428_p9 }
  0x36   : > { %p426_p8 = pneg %p425_p4 }
  0x38   : > { %p431_p11 = pnand %p430_p2, %p426_p8 }
  0x3a   : > { %434 = shalt.err (!%p431_p11)
}
  0x3b   : > { %296 = dma.vmem_to_hbm [thread:$0]  (%p561_p3), %s194_s14, 128, %s196_s17, %s181_s15  }
  0x3c PF: > { %s207_s29 = sand.u32 1, %s465_s9   ;;  %p641_p12 = scmp.ge.s32.totalorder %s477_s12, 2 }
  0x3d   : > { %s208_s28 = scalar_lea.sflag [#allocation4], %s207_s29 }
  0x3e   : > { %p307_p13 = pnand %p641_p12, %p530_p6 }
  0x40   : > { %p308_p0 = pneg %p307_p13 }
  0x42   : > { %460 = dma.done.wait (%p308_p0), %s208_s28, 128  }
  0x43   : > { %462 = vsyncadd (%p308_p0), %s208_s28, 4294967168  ;;  %p16_p5 = scmp.ge.s32.totalorder %s548_s23, 4   ;;  %s642_s9 = smov %s469_s10 }
  0x44   : > { %s643_s10 = smov %s473_s11  ;;  %s644_s11 = smov %s557_s26 }
  0x45   : > { %s645_s12 = smov %s548_s23  ;;  %18 = sbr.rel (!%p16_p5) target bundleno = 6 (0x6), region = 77 }
  0x4a   :  { %214 = vsyncpa [#allocation3], 1 }
  0x4b   :  { %216 = vsyncpa [#allocation3 + $0x1], 1 }
  0x4c   :  { %217 = vsyncpa [#allocation6], 1 }
  0x4d   :  { %218 = vsyncpa [#allocation4], 1 }
  0x4e   :  { %220 = vsyncpa [#allocation4 + $0x1], 1 }

// kernel: tpu_custom_call.1
= control target key start
LH: loop header
LB: loop body
LE: loop exit
PB: predicated region body
PF: predicated region fallthrough
CT: control target
= control target key end

     0   :  { %18 = vsyncpa [#allocation3], 0  ;;  %s1498_s0 = inlined_call_operand.hbm [shape: f32[16,128], index: 0, kind: input, shape index: {}]   ;;  %s1499_s1 = inlined_call_operand.hbm [shape: bf16[128,128], index: 1, kind: input, shape index: {}]   ;;  %s1500_s2 = inlined_call_operand.hbm [shape: bf16[128,128], index: 2, kind: input, shape index: {}]   ;;  %s1501_s3 = inlined_call_operand.hbm [shape: bf16[128,128], index: 3, kind: input, shape index: {}]   ;;  %s1502_s4 = inlined_call_operand.hbm [shape: bf16[128,128], index: 4, kind: input, shape index: {}]   ;;  %s1503_s5 = inlined_call_operand.hbm [shape: bf16[128,128], index: 5, kind: input, shape index: {}]   ;;  %s1504_s6 = inlined_call_operand.vmem [shape: f32[1,128], index: 6, kind: input, shape index: {}]   ;;  %s1505_s7 = inlined_call_operand.hbm [shape: bf16[128,128], index: 7, kind: input, shape index: {}]   ;;  %s1506_s8 = inlined_call_operand.vmem [shape: f32[1,128], index: 8, kind: input, shape index: {}]   ;;  %s1507_s9 = inlined_call_operand.vmem [shape: f32[1,128], index: 9, kind: input, shape index: {}]   ;;  %s1508_s10 = inlined_call_operand.vmem [shape: f32[1,128], index: 10, kind: input, shape index: {}]   ;;  %s1509_s11 = inlined_call_operand.vmem [shape: f32[1,128], index: 11, kind: input, shape index: {}]   ;;  %s1510_s12 = inlined_call_operand.vmem [shape: f32[1,128], index: 12, kind: input, shape index: {}]   ;;  %s1511_s13 = inlined_call_operand.hbm [shape: f32[16,128], index: 13, kind: output, shape index: {}]  }
   0x1   :  { %19 = vsyncpa [#allocation6], 0 }
   0x2   :  { %20 = vsyncpa [#allocation9], 0 }
   0x3   :  { %21 = vsyncpa [#allocation12], 0  ;;  %s40_s27 = sshll.u32 %s1499_s1, 4  ;;  %s41_s27 = int_to_ptr.hbm [resolvable:$true] %s40_s27 }
   0x4   :  { %22 = vsyncpa [#allocation4], 0  ;;  %s1326_s28 = smov [#allocation5]   ;;  %s66_s15 = sshll.u32 %s1501_s3, 4  ;;  %s67_s15 = int_to_ptr.hbm [resolvable:$true] %s66_s15 }
   0x5   :  { %s42_s29 = sshll.u32 %s1326_s28, 4  ;;  %s1327_s16 = smov 64   ;;  %s43_s29 = int_to_ptr.vmem [resolvable:$true] %s42_s29 }
   0x6   :  { %s1328_s17 = smov 4   ;;  %s1329_s18 = smov [#allocation8]  }
   0x7   :  { %48 = dma.hbm_to_vmem [thread:$0]  %s41_s27, 1024, %s43_s29, [#allocation6], %s1327_s16, %s1327_s16, %s1328_s17  }
   0x8   :  { %s68_s19 = sshll.u32 %s1329_s18, 4  ;;  %s92_s21 = sshll.u32 %s1503_s5, 4  ;;  %s69_s19 = int_to_ptr.vmem [resolvable:$true] %s68_s19  ;;  %s93_s21 = int_to_ptr.hbm [resolvable:$true] %s92_s21 }
   0x9   :  { %74 = dma.hbm_to_vmem [thread:$0]  %s67_s15, 1024, %s69_s19, [#allocation9], %s1327_s16, %s1327_s16, %s1328_s17  }
   0xa   :  { %s27_s23 = sshll.u32 %s1498_s0, 4  ;;  %s1330_s24 = smov [#allocation11]   ;;  %s28_s23 = int_to_ptr.hbm [resolvable:$true] %s27_s23 }
   0xb   :  { %s94_s25 = sshll.u32 %s1330_s24, 4  ;;  %s1331_s26 = smov [#allocation2]   ;;  %s95_s25 = int_to_ptr.vmem [resolvable:$true] %s94_s25 }
   0xc   :  { %100 = dma.hbm_to_vmem [thread:$0]  %s93_s21, 1024, %s95_s25, [#allocation12], %s1327_s16, %s1327_s16, %s1328_s17  }
   0xd   :  { %s29_s5 = sshll.u32 %s1331_s26, 4  ;;  %s1332_s27 = smov 128   ;;  %s30_s5 = int_to_ptr.vmem [resolvable:$true] %s29_s5 }
   0xe   :  { %s1333_s28 = smov 8   ;;  %s53_s0 = sshll.u32 %s1500_s2, 4  ;;  %s54_s0 = int_to_ptr.hbm [resolvable:$true] %s53_s0 }
   0xf   :  { %35 = dma.hbm_to_vmem [thread:$0]  %s28_s23, 256, %s30_s5, [#allocation3], %s1332_s27, %s1332_s27, %s1333_s28  }
  0x10   :  { %s1334_s14 = smov [#allocation7]   ;;  %s79_s20 = sshll.u32 %s1502_s4, 4  ;;  %s80_s20 = int_to_ptr.hbm [resolvable:$true] %s79_s20 }
  0x11   :  { %s55_s15 = sshll.u32 %s1334_s14, 4  ;;  %s1335_s1 = smov [#allocation10]   ;;  %s56_s15 = int_to_ptr.vmem [resolvable:$true] %s55_s15 }
  0x12   :  { %61 = dma.hbm_to_vmem [thread:$0]  %s54_s0, 1024, %s56_s15, [#allocation6], %s1327_s16, %s1327_s16, %s1328_s17  }
  0x13   :  { %s81_s21 = sshll.u32 %s1335_s1, 4  ;;  %s107_s23 = sshll.u32 %s1505_s7, 4  ;;  %s82_s21 = int_to_ptr.vmem [resolvable:$true] %s81_s21  ;;  %s108_s23 = int_to_ptr.hbm [resolvable:$true] %s107_s23 }
  0x14   :  { %87 = dma.hbm_to_vmem [thread:$0]  %s80_s20, 1024, %s82_s21, [#allocation9], %s1327_s16, %s1327_s16, %s1328_s17  }
  0x15   :  { %s1336_s2 = smov [#allocation13]  }
  0x16   :  { %s109_s24 = sshll.u32 %s1336_s2, 4  ;;  %s110_s24 = int_to_ptr.vmem [resolvable:$true] %s109_s24 }
  0x17   :  { %115 = dma.hbm_to_vmem [thread:$0]  %s108_s23, 1024, %s110_s24, [#allocation12], %s1327_s16, %s1327_s16, %s1328_s17  }
  0x18   :  { %1316 = dma.done.wait [#allocation3], 256  }
  0x19   :  { %1317 = vsyncadd [#allocation3], 4294967040 }
  0x1a   :  { %1318 = dma.done.wait [#allocation6], 2048  }
  0x1b   :  { %1319 = vsyncadd [#allocation6], 4294965248 }
  0x1c   :  { %1320 = dma.done.wait [#allocation9], 2048  }
  0x1d   :  { %1321 = vsyncadd [#allocation9], 4294965248 }
  0x1e   :  { %1322 = dma.done.wait [#allocation12], 2048  }
  0x1f   :  { %1323 = vsyncadd [#allocation12], 4294965248  ;;  %v1048_v0 = vld [vmem:[#allocation5 + $0x38] sm:$0xff]  ;;  %v1047_v2 = vld [vmem:[#allocation5 + $0x30] sm:$0xff]  ;;  %v409_v33 = vlaneseq  ;;  %vm416_vm1 = vcmask 130048   ;;  %s1338_s30 = smov [#allocation14]  }
  0x20   :  { %v1056_v1 = vld [vmem:[#allocation7 + $0x38] sm:$0xff]  ;;  %222 = vmatpush.bf16.msra.mxu0 %v1048_v0  ;;  %v1055_v3 = vld [vmem:[#allocation7 + $0x30] sm:$0xff]  ;;  %v1046_v4 = vld [vmem:[#allocation5 + $0x28] sm:$0xff]  ;;  %s831_s15 = sshll.u32 %s1511_s13, 4  ;;  %s832_s15 = int_to_ptr.hbm [resolvable:$true] %s831_s15 }
  0x21   :  { %301 = vmatpush.bf16.msra.mxu1 %v1056_v1  ;;  %v1054_v5 = vld [vmem:[#allocation7 + $0x28] sm:$0xff]  ;;  %v1045_v6 = vld [vmem:[#allocation5 + $0x20] sm:$0xff]  ;;  %v1044_v8 = vld [vmem:[#allocation5 + $0x18] sm:$0xff]  ;;  %v410_v34 = vand.u32 127, %v409_v33 }
  0x22   :  { %v1053_v7 = vld [vmem:[#allocation7 + $0x20] sm:$0xff]  ;;  %v1052_v9 = vld [vmem:[#allocation7 + $0x18] sm:$0xff]  ;;  %v1043_v10 = vld [vmem:[#allocation5 + $0x10] sm:$0xff] }
  0x23   :  { %v1051_v11 = vld [vmem:[#allocation7 + $0x10] sm:$0xff]  ;;  %v1042_v12 = vld [vmem:[#allocation5 + $0x8] sm:$0xff]  ;;  %v1041_v14 = vld [vmem:[#allocation5] sm:$0xff]  ;;  %vm411_vm0 = vcmp.lt.s32.totalorder %v410_v34, 12  ;;  %vm540_vm2 = vcmp.lt.s32.totalorder %v410_v34, 32 }
  0x24   :  { %223 = vmatpush.bf16.msra.mxu0 %v1047_v2  ;;  %v1050_v13 = vld [vmem:[#allocation7 + $0x8] sm:$0xff]  ;;  %v1049_v15 = vld [vmem:[#allocation7] sm:$0xff]  ;;  %v1451_v16 = vld [vmem:[#allocation2] sm:$0xff] }
  0x25   :  { %302 = vmatpush.bf16.msra.mxu1 %v1055_v3  ;;  %v1453_v17 = vld [vmem:[#allocation2 + $0x8] sm:$0xff]  ;;  %v1063_v20 = vld [vmem:[#allocation8 + $0x30] sm:$0xff]  ;;  %v1062_v21 = vld [vmem:[#allocation8 + $0x28] sm:$0xff] }
  0x26   :  { %v157_v18 = vpack.c.bf16 %v1453_v17, %v1451_v16  ;;  %v1064_v19 = vld [vmem:[#allocation8 + $0x38] sm:$0xff]  ;;  %v1061_v22 = vld [vmem:[#allocation8 + $0x20] sm:$0xff]  ;;  %v1059_v26 = vld [vmem:[#allocation8 + $0x10] sm:$0xff] }
  0x27   :  { %380 = vmatpush.bf16.msra.mxu2 %v1064_v19  ;;  %v1060_v24 = vld [vmem:[#allocation8 + $0x18] sm:$0xff]  ;;  %v1058_v28 = vld [vmem:[#allocation8 + $0x8] sm:$0xff]  ;;  %v1057_v30 = vld [vmem:[#allocation8] sm:$0xff] }
  0x28   :  { %224 = vmatpush.bf16.msra.mxu0 %v1046_v4  ;;  %v1072_v55 = vld [vmem:[#allocation10 + $0x38] sm:$0xff]  ;;  %v1071_v56 = vld [vmem:[#allocation10 + $0x30] sm:$0xff]  ;;  %v1070_v57 = vld [vmem:[#allocation10 + $0x28] sm:$0xff] }
  0x29   :  { %303 = vmatpush.bf16.msra.mxu1 %v1054_v5  ;;  %v1069_v58 = vld [vmem:[#allocation10 + $0x20] sm:$0xff]  ;;  %v1068_v59 = vld [vmem:[#allocation10 + $0x18] sm:$0xff]  ;;  %v1067_v60 = vld [vmem:[#allocation10 + $0x10] sm:$0xff] }
  0x2a   :  { %v1066_v61 = vld [vmem:[#allocation10 + $0x8] sm:$0xff]  ;;  %v1065_v62 = vld [vmem:[#allocation10] sm:$0xff] }
  0x2b   :  { %381 = vmatpush.bf16.msra.mxu2 %v1063_v20  ;;  %v1073_v34 = vld [vmem:[#allocation11] sm:$0xff] }
  0x2c   :  { %225 = vmatpush.bf16.msra.mxu0 %v1045_v6 }
  0x2d   :  { %304 = vmatpush.bf16.msra.mxu1 %v1053_v7 }
  0x2f   :  { %382 = vmatpush.bf16.msra.mxu2 %v1062_v21 }
  0x30   :  { %226 = vmatpush.bf16.msra.mxu0 %v1044_v8  ;;  %v1337_v8 = vmov 0.0  }
  0x31   :  { %305 = vmatpush.bf16.msra.mxu1 %v1052_v9  ;;  %v1462_v9 = vsel %vm540_vm2, 1.0, %v1337_v8  ;;  %v1104_v8 = vld [vmem:[%s1504_s6] ss:$0 sm:$0xff] }
  0x33   :  { %383 = vmatpush.bf16.msra.mxu2 %v1061_v22 }
  0x34   :  { %227 = vmatpush.bf16.msra.mxu0 %v1043_v10 }
  0x35   :  { %306 = vmatpush.bf16.msra.mxu1 %v1051_v11 }
  0x37   :  { %384 = vmatpush.bf16.msra.mxu2 %v1060_v24 }
  0x38   :  { %228 = vmatpush.bf16.msra.mxu0 %v1042_v12 }
  0x39   :  { %307 = vmatpush.bf16.msra.mxu1 %v1050_v13 }
  0x3b   :  { %385 = vmatpush.bf16.msra.mxu2 %v1059_v26 }
  0x3c   :  { %229 = vmatpush.bf16.msra.mxu0 %v1041_v14 }
  0x3d   :  { %308 = vmatpush.bf16.msra.mxu1 %v1049_v15 }
  0x3f   :  { %230 = vmatmul.bf16.vlgmr.msra.gmra.mxu0 %v157_v18  ;;  %386 = vmatpush.bf16.msra.mxu2 %v1058_v28  ;;  %v1078_v28 = vld [vmem:[#allocation11 + $0x28] sm:$0xff] }
  0x40   :  { %309 = vmatmul.bf16.vlgmr.msra.gmra.mxu1 %v157_v18 }
  0x43   :  { %387 = vmatpush.bf16.msra.mxu2 %v1057_v30  ;;  %v1076_v30 = vld [vmem:[#allocation11 + $0x18] sm:$0xff] }
  0x46   :  { %388 = vmatmul.bf16.vlgmr.msra.gmra.mxu2 %v157_v18 }
  0xbc   :  { %v231_v25 = vpop.f32.mrf.mxu0 }
  0xbd   :  { %v310_v23 = vpop.f32.mrf.mxu1 }
  0xc4   :  { %v233_v31 = vpop.f32.mrf.mxu0 }
  0xc5   :  { %v312_v27 = vpop.f32.mrf.mxu1  ;;  %v236_v32 = vpack.c.bf16 %v233_v31, %v231_v25  ;;  %v1075_v31 = vld [vmem:[#allocation11 + $0x10] sm:$0xff] }
  0xc6   :  { %v315_v29 = vpack.c.bf16 %v312_v27, %v310_v23  ;;  %v1080_v27 = vld [vmem:[#allocation11 + $0x38] sm:$0xff] }
  0xc7   :  { %666 = vmatpush.bf16.msrb.mxu0 %v1080_v27 }
  0xc8   :  { %402 = vmatpush.bf16.xpose.msra.mxu3 %v315_v29  ;;  %v1077_v29 = vld [vmem:[#allocation11 + $0x20] sm:$0xff] }
  0xc9   :  { %v389_v37 = vpop.f32.mrf.mxu2 }
  0xcf   :  { %403 = vmatmul.bf16.vlgmr.msra.gmra.mxu3 %v236_v32  ;;  %v1074_v32 = vld [vmem:[#allocation11 + $0x8] sm:$0xff] }
  0xd1   :  { %v391_v41 = vpop.f32.mrf.mxu2 }
  0xd2   :  { %v394_v43 = vpack.c.bf16 %v391_v41, %v389_v37  ;;  %v1088_v37 = vld [vmem:[#allocation13 + $0x38] sm:$0xff] }
  0xd3   :  { %751 = vmatpush.bf16.msrb.mxu1 %v1088_v37 }
  0xd4   :  { %446 = vmatpush.bf16.msrb.mxu3 %v394_v43 }
  0xd8   :  { %522 = vmatpush.bf16.msra.mxu3 %v1072_v55 }
  0xdc   :  { %523 = vmatpush.bf16.msra.mxu3 %v1071_v56 }
  0xe0   :  { %524 = vmatpush.bf16.msra.mxu3 %v1070_v57  ;;  %v1102_v57 = vld [vmem:[%s1507_s9] ss:$0 sm:$0xff] }
  0xe4   :  { %525 = vmatpush.bf16.msra.mxu3 %v1069_v58 }
  0xe8   :  { %526 = vmatpush.bf16.msra.mxu3 %v1068_v59 }
  0xec   :  { %527 = vmatpush.bf16.msra.mxu3 %v1067_v60 }
  0xf0   :  { %528 = vmatpush.bf16.msra.mxu3 %v1066_v61 }
  0xf4   :  { %529 = vmatpush.bf16.msra.mxu3 %v1065_v62  ;;  %v1103_v62 = vld [vmem:[%s1508_s10] ss:$0 sm:$0xff] }
 0x152   :  { %v404_v35 = vpop.f32.mrf.mxu3 }
 0x153   :  { %v414_v36 = vsel %vm411_vm0, %v404_v35, -1e+30 }
 0x154   :  { %v417_v38 = vsel %vm416_vm1, %v414_v36, -inf }
 0x155   :  { %418 = vmax.xlane.f32.xlu0 %v417_v38 }
 0x15a   :  { %v406_v39 = vpop.f32.mrf.mxu3 }
 0x15b   :  { %v415_v40 = vsel %vm411_vm0, %v406_v39, -1e+30 }
 0x15c   :  { %v420_v42 = vsel %vm416_vm1, %v415_v40, -inf }
 0x15d   :  { %421 = vmax.xlane.f32.xlu0 %v420_v42 }
 0x1c8   :  { %v419_v44 = vpop.xlane.xlu0 %418 }
 0x1c9   :  { %v423_v45 = vsub.f32 %v414_v36, %v419_v44  ;;  %v1086_v44 = vld [vmem:[#allocation13 + $0x28] sm:$0xff] }
 0x1cb   :  { %v425_v46 = vmul.f32 1.442695, %v423_v45 }
 0x1cd   :  { %1108 = vpow2.f32 %v425_v46 }
 0x1d0   :  { %v422_v47 = vpop.xlane.xlu0 %421 }
 0x1d1   :  { %v424_v48 = vsub.f32 %v415_v40, %v422_v47  ;;  %v1087_v40 = vld [vmem:[#allocation13 + $0x30] sm:$0xff]  ;;  %v1085_v47 = vld [vmem:[#allocation13 + $0x20] sm:$0xff] }
 0x1d2   :  { %752 = vmatpush.bf16.msrb.mxu1 %v1087_v40 }
 0x1d3   :  { %v1109_v49 = vpop.eup %1108  ;;  %v427_v50 = vmul.f32 1.442695, %v424_v48 }
 0x1d4   :  { %v429_v51 = vsel %vm416_vm1, %v1109_v49, 0.0 }
 0x1d5   :  { %1110 = vpow2.f32 %v427_v50  ;;  %430 = vadd.xlane.f32.xlu1 %v429_v51 }
 0x1d6   :  { %753 = vmatpush.bf16.msrb.mxu1 %v1086_v44 }
 0x1da   :  { %754 = vmatpush.bf16.msrb.mxu1 %v1085_v47 }
 0x1db   :  { %v1111_v52 = vpop.eup %1110 }
 0x1dc   :  { %v432_v53 = vsel %vm416_vm1, %v1111_v52, 0.0  ;;  %v435_v54 = vpack.c.bf16 %v1111_v52, %v1109_v49 }
 0x1dd   :  { %433 = vadd.xlane.f32.xlu1 %v432_v53 }
 0x1de   :  { %943 = vmatmul.msk.bf16.vlgmr.msrb.gmra.mxu3 %vm416_vm1, %v435_v54 }
 0x248   :  { %v431_v63 = vpop.xlane.xlu1 %430 }
 0x249   :  { %1112 = vrcp.f32 %v431_v63 }
 0x24f   :  { %v1113_v2 = vpop.eup %1112 }
 0x250   :  { %v434_v0 = vpop.xlane.xlu1 %433 }
 0x251   :  { %1114 = vrcp.f32 %v434_v0 }
 0x257   :  { %v1115_v3 = vpop.eup %1114 }
 0x261   :  { %v448_v1 = vpop.f32.mrf.mxu3 }
 0x262   :  { %v455_v5 = vmul.f32 %v1113_v2, %v448_v1 }
 0x269   :  { %v450_v4 = vpop.f32.mrf.mxu3 }
 0x26a   :  { %v456_v6 = vmul.f32 %v1115_v3, %v450_v4  ;;  %v1084_v3 = vld [vmem:[#allocation13 + $0x18] sm:$0xff]  ;;  %v1083_v4 = vld [vmem:[#allocation13 + $0x10] sm:$0xff] }
 0x26b   :  { %755 = vmatpush.bf16.msrb.mxu1 %v1084_v3 }
 0x26c   :  { %v457_v7 = vpack.c.bf16 %v456_v6, %v455_v5  ;;  %v1082_v5 = vld [vmem:[#allocation13 + $0x8] sm:$0xff]  ;;  %v1081_v6 = vld [vmem:[#allocation13] sm:$0xff] }
 0x26e   :  { %530 = vmatmul.bf16.vlgmr.msra.gmra.mxu3 %v457_v7 }
 0x26f   :  { %756 = vmatpush.bf16.msrb.mxu1 %v1083_v4 }
 0x273   :  { %757 = vmatpush.bf16.msrb.mxu1 %v1082_v5 }
 0x277   :  { %758 = vmatpush.bf16.msrb.mxu1 %v1081_v6 }
 0x2f1   :  { %v531_v10 = vpop.f32.mrf.mxu3 }
 0x2f2   :  { %v536_v11 = vadd.f32 %v531_v10, %v1451_v16 }
 0x2f4   :  { %v543_v12 = vmul.f32 %v1462_v9, %v536_v11 }
 0x2f6   :  { %545 = vadd.xlane.f32.xlu2 %v543_v12 }
 0x2f9   :  { %v533_v13 = vpop.f32.mrf.mxu3 }
 0x2fa   :  { %v537_v14 = vadd.f32 %v533_v13, %v1453_v17  ;;  %v1079_v17 = vld [vmem:[#allocation11 + $0x30] sm:$0xff] }
 0x2fb   :  { %667 = vmatpush.bf16.msrb.mxu0 %v1079_v17 }
 0x2fc   :  { %v544_v15 = vmul.f32 %v1462_v9, %v537_v14 }
 0x2fe   :  { %547 = vadd.xlane.f32.xlu2 %v544_v15 }
 0x2ff   :  { %668 = vmatpush.bf16.msrb.mxu0 %v1078_v28 }
 0x303   :  { %669 = vmatpush.bf16.msrb.mxu0 %v1077_v29 }
 0x307   :  { %670 = vmatpush.bf16.msrb.mxu0 %v1076_v30 }
 0x30b   :  { %671 = vmatpush.bf16.msrb.mxu0 %v1075_v31 }
 0x30f   :  { %672 = vmatpush.bf16.msrb.mxu0 %v1074_v32 }
 0x313   :  { %673 = vmatpush.bf16.msrb.mxu0 %v1073_v34 }
 0x369   :  { %v546_v18 = vpop.xlane.xlu2 %545 }
 0x36a   :  { %v549_v19 = vmul.f32 0.03125, %v546_v18  ;;  %v1105_v18 = vld [vmem:[%s1506_s8] ss:$0 sm:$0xff] }
 0x36c   :  { %v551_v20 = vsub.f32 %v536_v11, %v549_v19 }
 0x36e   :  { %v553_v21 = vmul.f32 %v1462_v9, %v551_v20 }
 0x370   :  { %v555_v22 = vmul.f32 %v553_v21, %v553_v21 }
 0x371   :  { %v548_v23 = vpop.xlane.xlu2 %547 }
 0x372   :  { %v550_v24 = vmul.f32 0.03125, %v548_v23  ;;  %557 = vadd.xlane.f32.xlu0 %v555_v22 }
 0x374   :  { %v552_v25 = vsub.f32 %v537_v14, %v550_v24 }
 0x376   :  { %v554_v16 = vmul.f32 %v1462_v9, %v552_v25 }
 0x378   :  { %v556_v26 = vmul.f32 %v554_v16, %v554_v16 }
 0x37a   :  { %559 = vadd.xlane.f32.xlu1 %v556_v26 }
 0x3e5   :  { %v558_v33 = vpop.xlane.xlu0 %557 }
 0x3e6   :  { %v561_v35 = vmul.f32 0.03125, %v558_v33 }
 0x3e8   :  { %v563_v36 = vadd.f32 1e-05, %v561_v35 }
 0x3ea   :  { %1116 = vrsqrt.f32 %v563_v36  ;;  %vm571_vm4 = vweird.f32 %v563_v36 }
 0x3ed   :  { %v560_v38 = vpop.xlane.xlu1 %559 }
 0x3ee   :  { %v562_v39 = vmul.f32 0.03125, %v560_v38 }
 0x3f0   :  { %v1117_v41 = vpop.eup %1116  ;;  %v564_v42 = vadd.f32 1e-05, %v562_v39 }
 0x3f1   :  { %v566_v43 = vmul.f32 %v1117_v41, %v563_v36  ;;  %vm572_vm3 = vweird.f32 %v1117_v41 }
 0x3f2   :  { %1118 = vrsqrt.f32 %v564_v42  ;;  %vm573_vm5 = vmor %vm571_vm4, %vm572_vm3  ;;  %vm581_vm7 = vweird.f32 %v564_v42 }
 0x3f3   :  { %v567_v45 = vmul.f32 %v1117_v41, %v566_v43 }
 0x3f5   :  { %v568_v46 = vmul.f32 0.5, %v567_v45 }
 0x3f7   :  { %v569_v48 = vsub.f32 1.5, %v568_v46 }
 0x3f8   :  { %v1119_v49 = vpop.eup %1118 }
 0x3f9   :  { %v570_v50 = vmul.f32 %v1117_v41, %v569_v48  ;;  %v576_v51 = vmul.f32 %v1119_v49, %v564_v42  ;;  %vm582_vm6 = vweird.f32 %v1119_v49  ;;  %v1106_v48 = vld [vmem:[%s1509_s11] ss:$0 sm:$0xff]  ;;  %s829_s11 = sshll.u32 %s1338_s30, 4  ;;  %s830_s11 = int_to_ptr.vmem [resolvable:$true] %s829_s11 }
 0x3fa   :  { %vm583_vm8 = vmor %vm581_vm7, %vm582_vm6 }
 0x3fb   :  { %v577_v52 = vmul.f32 %v1119_v49, %v576_v51  ;;  %v574_v53 = vsel %vm573_vm5, %v1117_v41, %v570_v50 }
 0x3fc   :  { %v585_v56 = vmul.f32 %v574_v53, %v551_v20 }
 0x3fd   :  { %v578_v54 = vmul.f32 0.5, %v577_v52  ;;  %v1107_v52 = vld [vmem:[%s1510_s12] ss:$0 sm:$0xff] }
 0x3fe   :  { %v590_v61 = vmul.f32 %v1102_v57, %v585_v56 }
 0x3ff   :  { %v579_v55 = vsub.f32 1.5, %v578_v54 }
 0x400   :  { %v595_v0 = vadd.f32 %v1103_v62, %v590_v61 }
 0x401   :  { %v580_v58 = vmul.f32 %v1119_v49, %v579_v55 }
 0x403   :  { %v584_v59 = vsel %vm583_vm8, %v1119_v49, %v580_v58 }
 0x404   :  { %v586_v60 = vmul.f32 %v584_v59, %v552_v25 }
 0x406   :  { %v591_v63 = vmul.f32 %v1102_v57, %v586_v60 }
 0x408   :  { %v596_v1 = vadd.f32 %v1103_v62, %v591_v63 }
 0x40a   :  { %v597_v2 = vpack.c.bf16 %v596_v1, %v595_v0 }
 0x40c   :  { %674 = vmatmul.bf16.vlgmr.msrb.gmra.mxu0 %v597_v2 }
 0x489   :  { %v675_v7 = vpop.f32.mrf.mxu0 }
 0x48a   :  { %v676_v10 = vadd.f32 %v1104_v8, %v675_v7 }
 0x48c   :  { %v680_v13 = vmax.f32 %v676_v10, 0.0 }
 0x491   :  { %v677_v11 = vpop.f32.mrf.mxu0 }
 0x492   :  { %v678_v12 = vadd.f32 %v1104_v8, %v677_v11 }
 0x494   :  { %v681_v14 = vmax.f32 %v678_v12, 0.0 }
 0x496   :  { %v682_v15 = vpack.c.bf16 %v681_v14, %v680_v13 }
 0x498   :  { %759 = vmatmul.bf16.vlgmr.msrb.gmra.mxu1 %v682_v15 }
 0x515   :  { %v760_v19 = vpop.f32.mrf.mxu1 }
 0x516   :  { %v761_v20 = vadd.f32 %v1105_v18, %v760_v19 }
 0x518   :  { %v765_v21 = vadd.f32 %v761_v20, %v595_v0 }
 0x51a   :  { %v769_v22 = vmul.f32 %v1462_v9, %v765_v21 }
 0x51c   :  { %771 = vadd.xlane.f32.xlu2 %v769_v22 }
 0x51d   :  { %v762_v23 = vpop.f32.mrf.mxu1 }
 0x51e   :  { %v763_v24 = vadd.f32 %v1105_v18, %v762_v23 }
 0x520   :  { %v766_v25 = vadd.f32 %v763_v24, %v596_v1 }
 0x522   :  { %v770_v16 = vmul.f32 %v1462_v9, %v766_v25 }
 0x524   :  { %773 = vadd.xlane.f32.xlu0 %v770_v16 }
 0x58f   :  { %v772_v26 = vpop.xlane.xlu2 %771 }
 0x590   :  { %v775_v27 = vmul.f32 0.03125, %v772_v26 }
 0x592   :  { %v777_v17 = vsub.f32 %v765_v21, %v775_v27 }
 0x594   :  { %v779_v28 = vmul.f32 %v1462_v9, %v777_v17 }
 0x596   :  { %v781_v29 = vmul.f32 %v779_v28, %v779_v28 }
 0x597   :  { %v774_v30 = vpop.xlane.xlu0 %773 }
 0x598   :  { %v776_v31 = vmul.f32 0.03125, %v774_v30  ;;  %783 = vadd.xlane.f32.xlu1 %v781_v29 }
 0x59a   :  { %v778_v32 = vsub.f32 %v766_v25, %v776_v31 }
 0x59c   :  { %v780_v33 = vmul.f32 %v1462_v9, %v778_v32 }
 0x59e   :  { %v782_v34 = vmul.f32 %v780_v33, %v780_v33 }
 0x5a0   :  { %785 = vadd.xlane.f32.xlu2 %v782_v34 }
 0x60b   :  { %v784_v35 = vpop.xlane.xlu1 %783 }
 0x60c   :  { %v787_v36 = vmul.f32 0.03125, %v784_v35 }
 0x60e   :  { %v789_v37 = vadd.f32 1e-05, %v787_v36 }
 0x610   :  { %1120 = vrsqrt.f32 %v789_v37  ;;  %vm797_vm10 = vweird.f32 %v789_v37 }
 0x613   :  { %v786_v38 = vpop.xlane.xlu2 %785 }
 0x614   :  { %v788_v39 = vmul.f32 0.03125, %v786_v38 }
 0x616   :  { %v1121_v40 = vpop.eup %1120  ;;  %v790_v41 = vadd.f32 1e-05, %v788_v39 }
 0x617   :  { %v792_v42 = vmul.f32 %v1121_v40, %v789_v37  ;;  %vm798_vm9 = vweird.f32 %v1121_v40 }
 0x618   :  { %1122 = vrsqrt.f32 %v790_v41  ;;  %vm799_vm11 = vmor %vm797_vm10, %vm798_vm9  ;;  %vm807_vm13 = vweird.f32 %v790_v41 }
 0x619   :  { %v793_v43 = vmul.f32 %v1121_v40, %v792_v42 }
 0x61b   :  { %v794_v44 = vmul.f32 0.5, %v793_v43 }
 0x61d   :  { %v795_v45 = vsub.f32 1.5, %v794_v44 }
 0x61e   :  { %v1123_v46 = vpop.eup %1122 }
 0x61f   :  { %v796_v47 = vmul.f32 %v1121_v40, %v795_v45  ;;  %v802_v9 = vmul.f32 %v1123_v46, %v790_v41  ;;  %vm808_vm12 = vweird.f32 %v1123_v46 }
 0x620   :  { %vm809_vm14 = vmor %vm807_vm13, %vm808_vm12 }
 0x621   :  { %v800_v49 = vsel %vm799_vm11, %v1121_v40, %v796_v47  ;;  %v803_v50 = vmul.f32 %v1123_v46, %v802_v9 }
 0x622   :  { %v811_v51 = vmul.f32 %v800_v49, %v777_v17 }
 0x623   :  { %v804_v53 = vmul.f32 0.5, %v803_v50 }
 0x624   :  { %v816_v54 = vmul.f32 %v1106_v48, %v811_v51 }
 0x625   :  { %v805_v55 = vsub.f32 1.5, %v804_v53 }
 0x626   :  { %v821_v56 = vadd.f32 %v1107_v52, %v816_v54 }
 0x627   :  { %v806_v57 = vmul.f32 %v1123_v46, %v805_v55 }
 0x628   :  { %823 = vst [vmem:[#allocation14] sm:$0xff] %v821_v56 }
 0x629   :  { %v810_v58 = vsel %vm809_vm14, %v1123_v46, %v806_v57 }
 0x62a   :  { %v812_v59 = vmul.f32 %v810_v58, %v778_v32 }
 0x62c   :  { %v817_v60 = vmul.f32 %v1106_v48, %v812_v59 }
 0x62e   :  { %v822_v61 = vadd.f32 %v1107_v52, %v817_v60 }
 0x630   :  { %824 = vst [vmem:[#allocation14 + $0x8] sm:$0xff] %v822_v61 }
 0x631   :  { %837 = dma.vmem_to_hbm [thread:$0]  %s830_s11, 256, %s832_s15, [#allocation4], %s1332_s27, %s1332_s27, %s1333_s28  }
 0x632   :  { %1324 = dma.done.wait [#allocation4], 256  }
 0x633   :  { %1325 = vsyncadd [#allocation4], 4294967040 }
 0x634   :  { %842 = vsyncpa [#allocation3], 1 }
 0x635   :  { %843 = vsyncpa [#allocation6], 1 }
 0x636   :  { %844 = vsyncpa [#allocation9], 1 }
 0x637   :  { %845 = vsyncpa [#allocation12], 1 }
 0x638   :  { %846 = vsyncpa [#allocation4], 1 }

</bundles_post_ra>
